<compile_context>
chip_gen: v7x
topology: tpu7x:2x2x1
jax: 0.10.0
libtpu: 0.0.40
codegen_flags: <defaults>
</compile_context>

<pallas_src>
import jax
import jax.numpy as jnp
from jax.experimental import pallas as pl
from jax.experimental.pallas import tpu as pltpu


def _round_up(x, m):
    return ((x + m - 1) // m) * m


def _cdiv(a, b):
    return -(-a // b)


def _default_vmem_limit():
    """~80% of the TensorCore's VMEM capacity (leaves compiler headroom)."""
    cap = None
    try:
        info = pltpu.get_tpu_info()
        cap = getattr(info, "vmem_capacity_bytes", None)
    except Exception:
        cap = None
    if not cap:
        # Conservative fallback: full v7x physical / half of v5e-v6e physical.
        cap = 64 * 1024 * 1024
    return int(cap * 0.8)


def _mlp_kernel(x_ref, w1_ref, b1_ref, w2_ref, b2_ref, o_ref, acc_ref):
    # x : [TB, I]  f32     w1: [I, TH]  bf16    b1: [1, TH] f32
    # w2: [TH, C]  bf16    b2: [1, C]   f32     o : [TB, C] f32
    # acc: [TB, C] f32 scratch (accumulates over the hidden-dim grid axis)
    k = pl.program_id(1)

    @pl.when(k == 0)
    def _():
        acc_ref[...] = jnp.zeros_like(acc_ref)

    xb = x_ref[...].astype(jnp.bfloat16)
    h = jnp.dot(xb, w1_ref[...], preferred_element_type=jnp.float32)
    h = jnp.maximum(h + b1_ref[...], 0.0)          # f32 bias + ReLU epilogue
    acc_ref[...] += jnp.dot(h.astype(jnp.bfloat16), w2_ref[...],
                            preferred_element_type=jnp.float32)

    @pl.when(k == pl.num_programs(1) - 1)
    def _():
        o_ref[...] = (acc_ref[...] + b2_ref[...]).astype(o_ref.dtype)


def prepare_simple_nn_params(w1, b1, w2, b2, *, vmem_limit_bytes=None):
    """One-time parameter preparation (pad hidden dim, cast to bf16).

    w1: [input_size, hidden]   b1: [hidden]
    w2: [hidden, num_classes]  b2: [num_classes]
    """
    I, H = w1.shape
    C = w2.shape[1]
    assert w2.shape[0] == H and b1.shape == (H,) and b2.shape == (C,)

    vmem_limit = vmem_limit_bytes or _default_vmem_limit()

    # Pad only the hidden dim (it is a lane dim of w1/b1 and a sublane dim of
    # w2).  256-multiples better fill the v6e/v7x 256x256 MXU when H is large.
    h_mult = 256 if H >= 256 else 128
    Hp = _round_up(H, h_mult)

    # Tile the hidden (contraction) dim only if resident weights would not fit
    # a comfortable share of VMEM (v7x: 64 MiB physical -> ~20 MiB budget).
    weight_budget = max(1, int(vmem_limit * 0.4))
    weight_bytes = (I * Hp + Hp * C) * 2            # bf16 weights
    n_k = max(1, _cdiv(weight_bytes, weight_budget))
    TH = _round_up(_cdiv(Hp, n_k), h_mult)
    n_k = _cdiv(Hp, TH)
    Hp = n_k * TH

    f32, bf16 = jnp.float32, jnp.bfloat16
    w1p = jnp.zeros((I, Hp), bf16).at[:, :H].set(w1.astype(bf16))
    b1p = jnp.zeros((1, Hp), f32).at[0, :H].set(b1.astype(f32))
    w2p = jnp.zeros((Hp, C), bf16).at[:H, :].set(w2.astype(bf16))
    b2p = jnp.reshape(b2.astype(f32), (1, C))

    return {
        "w1": w1p, "b1": b1p, "w2": w2p, "b2": b2p,
        "dims": (I, H, C), "hp": Hp, "block_h": TH, "n_k": n_k,
        "vmem_limit": vmem_limit,
    }


def simple_nn_forward(x, params, *, block_batch=1024):
    """Fused forward pass: relu(x @ w1 + b1) @ w2 + b2.

    x: [B, input_size] f32; params: output of prepare_simple_nn_params.
    Returns [B, num_classes] f32.
    """
    I, H, C = params["dims"]
    Hp, TH, n_k = params["hp"], params["block_h"], params["n_k"]
    vmem_limit = params["vmem_limit"]
    w1p, b1p, w2p, b2p = params["w1"], params["b1"], params["w2"], params["b2"]

    B = x.shape[0]
    assert x.shape == (B, I)
    f32 = jnp.float32

    # Batch tile: multiple of 16 (bf16 sublane packing); aim for >=2 grid steps
    # when the batch allows it so both v7x TensorCores get work.
    n_b = max(_cdiv(B, block_batch), 2 if B >= 32 else 1)
    TB = _round_up(_cdiv(B, n_b), 16)

    # Clamp TB so activation tiles + accumulator fit what VMEM leaves after the
    # resident weight blocks.
    w_nbuf = 1 if n_k == 1 else 2
    resident = (I * TH + TH * C) * 2 * w_nbuf + (TH + C) * 4
    per_row = I * 4 * 2 + C * 4 * 2 + C * 4   # x (2 bufs) + out (2 bufs) + acc
    avail = int(vmem_limit * 0.75) - resident
    if avail > 0:
        TB = min(TB, max(16, (avail // per_row) // 16 * 16))
    Bp = _round_up(B, TB)
    n_b = Bp // TB

    # Only the batch dim is ever padded, and only when needed.
    xp = x if Bp == B else jnp.pad(x, ((0, Bp - B), (0, 0)))

    # Invariant weight/bias blocks are single-buffered when not tiled over k.
    wmode = pl.Buffered(1) if n_k == 1 else pl.Buffered(2)

    # Self-consistent cost hint: padded flops; weights counted once when they
    # stay resident across the batch axis.
    flops = 2 * Bp * (I * Hp + Hp * C)
    w_fetches = 1 if n_k == 1 else n_b
    bytes_accessed = (Bp * I * 4 + Bp * C * 4
                      + ((I * Hp + Hp * C) * 2 + (Hp + C) * 4) * w_fetches)

    out_padded = pl.pallas_call(
        _mlp_kernel,
        out_shape=jax.ShapeDtypeStruct((Bp, C), f32),
        grid_spec=pltpu.PrefetchScalarGridSpec(
            num_scalar_prefetch=0,
            grid=(n_b, n_k),
            in_specs=[
                pl.BlockSpec((TB, I), lambda i, k: (i, 0)),     # x: batch-tiled
                pl.BlockSpec((I, TH), lambda i, k: (0, k), pipeline_mode=wmode),
                pl.BlockSpec((1, TH), lambda i, k: (0, k), pipeline_mode=wmode),
                pl.BlockSpec((TH, C), lambda i, k: (k, 0), pipeline_mode=wmode),
                pl.BlockSpec((1, C), lambda i, k: (0, 0),
                             pipeline_mode=pl.Buffered(1)),
            ],
            out_specs=pl.BlockSpec((TB, C), lambda i, k: (i, 0)),
            scratch_shapes=[pltpu.VMEM((TB, C), f32)],
        ),
        compiler_params=pltpu.CompilerParams(
            dimension_semantics=("parallel", "arbitrary"),
            vmem_limit_bytes=vmem_limit,
        ),
        cost_estimate=pl.CostEstimate(
            flops=flops, transcendentals=0, bytes_accessed=bytes_accessed),
    )(xp, w1p, b1p, w2p, b2p)

    return out_padded[:B] if Bp != B else out_padded


if __name__ == "__main__":
    # Deterministic parameter / input construction (small shapes).
    # TODO(synk): at these toy sizes (~6 KFLOP) the kernel is launch/DMA-overhead
    # bound; the tiling/residency logic pays off at realistic batch/feature dims.
    input_size, hidden_size, num_classes = 32, 64, 16
    batch = 8

    key = jax.random.PRNGKey(0)
    kx, k1, kb1, k2, kb2 = jax.random.split(key, 5)

    x = jax.random.normal(kx, (batch, input_size), dtype=jnp.float32)
    # PyTorch Linear weight is [out, in]; we store transposed [in, out].
    w1 = jax.random.normal(k1, (input_size, hidden_size), dtype=jnp.float32) * 0.1
    b1 = jax.random.normal(kb1, (hidden_size,), dtype=jnp.float32) * 0.1
    w2 = jax.random.normal(k2, (hidden_size, num_classes), dtype=jnp.float32) * 0.1
    b2 = jax.random.normal(kb2, (num_classes,), dtype=jnp.float32) * 0.1

    params = prepare_simple_nn_params(w1, b1, w2, b2)   # one-time pad + bf16 cast
    out = simple_nn_forward(x, params)
    out = jax.block_until_ready(out)

    # Pure-JAX f32 reference; tolerance reflects the bf16 MXU operands
    # (accumulation stays f32).
    ref = jnp.maximum(x @ w1 + b1, 0.0) @ w2 + b2
    assert out.shape == (batch, num_classes)
    err = jnp.max(jnp.abs(out - ref))
    assert jnp.allclose(out, ref, atol=5e-2, rtol=5e-2), f"max abs err = {err}"

    print("KERNEL_OK")
</pallas_src>

<mosaic_0001>
module attributes {stable_mosaic.version = 11 : i64} {
  func.func @_mlp_kernel(%arg0: i32, %arg1: i32, %arg2: memref<16x32xf32, #tpu.memory_space<vmem>>, %arg3: memref<32x128xbf16, #tpu.memory_space<vmem>>, %arg4: memref<1x128xf32, #tpu.memory_space<vmem>>, %arg5: memref<128x16xbf16, #tpu.memory_space<vmem>>, %arg6: memref<1x16xf32, #tpu.memory_space<vmem>>, %arg7: memref<16x16xf32, #tpu.memory_space<vmem>>, %arg8: memref<16x16xf32, #tpu.memory_space<vmem>>) attributes {dimension_semantics = [#tpu.dimension_semantics<parallel>, #tpu.dimension_semantics<arbitrary>], iteration_bounds = array<i64: 1, 1>, scalar_prefetch = 0 : i64, scratch_operands = 1 : i64, tpu.core_type = #tpu.core_type<tc>, window_params = [{transform_indices = @transform_0, window_bounds = array<i64: 16, 32>}, {pipeline_mode = #tpu.pipeline_mode<synchronous>, transform_indices = @transform_1, window_bounds = array<i64: 32, 128>}, {pipeline_mode = #tpu.pipeline_mode<synchronous>, transform_indices = @transform_2, window_bounds = array<i64: 1, 128>}, {pipeline_mode = #tpu.pipeline_mode<synchronous>, transform_indices = @transform_3, window_bounds = array<i64: 128, 16>}, {pipeline_mode = #tpu.pipeline_mode<synchronous>, transform_indices = @transform_4, window_bounds = array<i64: 1, 16>}, {transform_indices = @transform_5, window_bounds = array<i64: 16, 16>}]} {
    %c0_i32 = arith.constant 0 : i32
    %0 = arith.cmpi eq, %arg1, %c0_i32 : i32
    %1 = arith.extui %0 : i1 to i32
    %c0_i32_0 = arith.constant 0 : i32
    %2 = arith.cmpi ne, %1, %c0_i32_0 : i32
    scf.if %2 {
      %cst_16 = arith.constant 0.000000e+00 : f32
      %21 = vector.broadcast %cst_16 : f32 to vector<16x16xf32>
      %c0_17 = arith.constant 0 : index
      %c0_18 = arith.constant 0 : index
      %22 = vector.load %arg8[%c0_17, %c0_18] : memref<16x16xf32, #tpu.memory_space<vmem>>, vector<16x16xf32>
      tpu.vector_store %arg8[%c0_17, %c0_18], %21 {strides = array<i32>} : memref<16x16xf32, #tpu.memory_space<vmem>>, vector<16x16xf32>,
    } else {
    }
    %c0 = arith.constant 0 : index
    %c0_1 = arith.constant 0 : index
    %3 = vector.load %arg2[%c0, %c0_1] : memref<16x32xf32, #tpu.memory_space<vmem>>, vector<16x32xf32>
    %4 = arith.truncf %3 : vector<16x32xf32> to vector<16x32xbf16>
    %c0_2 = arith.constant 0 : index
    %c0_3 = arith.constant 0 : index
    %5 = vector.load %arg3[%c0_2, %c0_3] : memref<32x128xbf16, #tpu.memory_space<vmem>>, vector<32x128xbf16>
    %cst = arith.constant dense<0.000000e+00> : vector<16x128xf32>
    %6 = tpu.matmul %4, %5, %cst {dimension_numbers = #tpu.dot_dimension_numbers<[1], [0], [0], [1], [0, 0, 1, 1], [], []>} : vector<16x32xbf16>, vector<32x128xbf16>, vector<16x128xf32> -> vector<16x128xf32>
    %c0_4 = arith.constant 0 : index
    %c0_5 = arith.constant 0 : index
    %7 = vector.load %arg4[%c0_4, %c0_5] : memref<1x128xf32, #tpu.memory_space<vmem>>, vector<1x128xf32>
    %8 = vector.broadcast %7 : vector<1x128xf32> to vector<16x128xf32>
    %9 = arith.addf %6, %8 : vector<16x128xf32>
    %cst_6 = arith.constant 0.000000e+00 : f32
    %10 = vector.broadcast %cst_6 : f32 to vector<16x128xf32>
    %11 = arith.maximumf %9, %10 : vector<16x128xf32>
    %c0_7 = arith.constant 0 : index
    %c0_8 = arith.constant 0 : index
    %12 = vector.load %arg8[%c0_7, %c0_8] : memref<16x16xf32, #tpu.memory_space<vmem>>, vector<16x16xf32>
    %13 = arith.truncf %11 : vector<16x128xf32> to vector<16x128xbf16>
    %c0_9 = arith.constant 0 : index
    %c0_10 = arith.constant 0 : index
    %14 = vector.load %arg5[%c0_9, %c0_10] : memref<128x16xbf16, #tpu.memory_space<vmem>>, vector<128x16xbf16>
    %cst_11 = arith.constant dense<0.000000e+00> : vector<16x16xf32>
    %15 = tpu.matmul %13, %14, %cst_11 {dimension_numbers = #tpu.dot_dimension_numbers<[1], [0], [0], [1], [0, 0, 1, 1], [], []>} : vector<16x128xbf16>, vector<128x16xbf16>, vector<16x16xf32> -> vector<16x16xf32>
    %16 = arith.addf %12, %15 : vector<16x16xf32>
    %c0_12 = arith.constant 0 : index
    %c0_13 = arith.constant 0 : index
    %17 = vector.load %arg8[%c0_12, %c0_13] : memref<16x16xf32, #tpu.memory_space<vmem>>, vector<16x16xf32>
    tpu.vector_store %arg8[%c0_12, %c0_13], %16 {strides = array<i32>} : memref<16x16xf32, #tpu.memory_space<vmem>>, vector<16x16xf32>,
    %c0_i32_14 = arith.constant 0 : i32
    %18 = arith.cmpi eq, %arg1, %c0_i32_14 : i32
    %19 = arith.extui %18 : i1 to i32
    %c0_i32_15 = arith.constant 0 : i32
    %20 = arith.cmpi ne, %19, %c0_i32_15 : i32
    scf.if %20 {
      %c0_16 = arith.constant 0 : index
      %c0_17 = arith.constant 0 : index
      %21 = vector.load %arg8[%c0_16, %c0_17] : memref<16x16xf32, #tpu.memory_space<vmem>>, vector<16x16xf32>
      %c0_18 = arith.constant 0 : index
      %c0_19 = arith.constant 0 : index
      %22 = vector.load %arg6[%c0_18, %c0_19] : memref<1x16xf32, #tpu.memory_space<vmem>>, vector<1x16xf32>
      %23 = vector.broadcast %22 : vector<1x16xf32> to vector<16x16xf32>
      %24 = arith.addf %21, %23 : vector<16x16xf32>
      %c0_20 = arith.constant 0 : index
      %c0_21 = arith.constant 0 : index
      %25 = vector.load %arg7[%c0_20, %c0_21] : memref<16x16xf32, #tpu.memory_space<vmem>>, vector<16x16xf32>
      tpu.vector_store %arg7[%c0_20, %c0_21], %24 {strides = array<i32>} : memref<16x16xf32, #tpu.memory_space<vmem>>, vector<16x16xf32>,
    } else {
    }
    return
  }
  func.func @transform_0(%arg0: i32, %arg1: i32) -> (i32, i32) {
    %c0_i32 = arith.constant 0 : i32
    %c0_i32_0 = arith.constant 0 : i32
    return %arg0, %c0_i32 : i32, i32
  }
  func.func @transform_1(%arg0: i32, %arg1: i32) -> (i32, i32) {
    %c0_i32 = arith.constant 0 : i32
    %c0_i32_0 = arith.constant 0 : i32
    return %c0_i32, %arg1 : i32, i32
  }
  func.func @transform_2(%arg0: i32, %arg1: i32) -> (i32, i32) {
    %c0_i32 = arith.constant 0 : i32
    %c0_i32_0 = arith.constant 0 : i32
    return %c0_i32, %arg1 : i32, i32
  }
  func.func @transform_3(%arg0: i32, %arg1: i32) -> (i32, i32) {
    %c0_i32 = arith.constant 0 : i32
    %c0_i32_0 = arith.constant 0 : i32
    return %arg1, %c0_i32 : i32, i32
  }
  func.func @transform_4(%arg0: i32, %arg1: i32) -> (i32, i32) {
    %c0_i32 = arith.constant 0 : i32
    %c0_i32_0 = arith.constant 0 : i32
    %c0_i32_1 = arith.constant 0 : i32
    return %c0_i32, %c0_i32_0 : i32, i32
  }
  func.func @transform_5(%arg0: i32, %arg1: i32) -> (i32, i32) {
    %c0_i32 = arith.constant 0 : i32
    %c0_i32_0 = arith.constant 0 : i32
    return %arg0, %c0_i32 : i32, i32
  }
}

</mosaic_0001>

<bundles_post_ra>
// kernel: tpu_custom_call.1
= control target key start
LH: loop header
LB: loop body
LE: loop exit
PB: predicated region body
PF: predicated region fallthrough
CT: control target
= control target key end

     0   :  { %v339_v1 = vmov 0.0   ;;  %vm340_vm0 = vmmov 0   ;;  %vm55_vm1 = vcmask 261120   ;;  %s434_s0 = inlined_call_operand.vmem [shape: f32[16,32], index: 0, kind: input, shape index: {}]   ;;  %s435_s1 = inlined_call_operand.vmem [shape: bf16[32,128], index: 1, kind: input, shape index: {}]   ;;  %s436_s2 = inlined_call_operand.vmem [shape: f32[1,128], index: 2, kind: input, shape index: {}]   ;;  %s437_s3 = inlined_call_operand.vmem [shape: bf16[128,16], index: 3, kind: input, shape index: {}]   ;;  %s438_s4 = inlined_call_operand.vmem [shape: f32[1,16], index: 4, kind: input, shape index: {}]   ;;  %s439_s5 = inlined_call_operand.hbm [shape: f32[16,16], index: 5, kind: output, shape index: {}]  }
   0x1   :  { %v305_v0 = vld [vmem:[%s435_s1] sm:$0xff]   ;;  %272 = vmatprep.subr.bf16.mxu0 %v339_v1  ;;  %v306_v2 = vld [vmem:[%s435_s1 + $0x8] sm:$0xff]   ;;  %280 = vmatprep.subr.bf16.mxu1 %v339_v1  ;;  %v309_v8 = vld [vmem:[%s437_s3 + $0x10] sm:$0xff]  }
   0x2   :  { %273 = vmatpush3.bf16.msra.mxu0 %v305_v0  ;;  %276 = vmatprep.mubr.msk.bf16.mxu0 %vm340_vm0, %v339_v1  ;;  %v29_v3 = vld [vmem:[%s434_s0] sm:$0xff]  ;;  %v30_v4 = vld [vmem:[%s434_s0 + $0x8] sm:$0xff] }
   0x3   :  { %274 = vmatprep.subr.bf16.mxu0 %v339_v1  ;;  %v307_v5 = vld [vmem:[%s437_s3] sm:$0xff]   ;;  %296 = vmatprep.mubr.msk.bf16.mxu1 %vm340_vm0, %v339_v1  ;;  %v31_v6 = vpack.c.bf16 %v30_v4, %v29_v3  ;;  %v308_v7 = vld [vmem:[%s437_s3 + $0x8] sm:$0xff]  }
   0x4   :  { %281 = vmatpush3.bf16.msra.mxu1 %v307_v5 }
   0x5   :  { %282 = vmatprep.subr.bf16.mxu1 %v339_v1 }
   0x6   :  { %275 = vmatpush3.bf16.msra.mxu0 %v306_v2 }
   0x8   :  { %283 = vmatpush3.bf16.msra.mxu1 %v308_v7 }
   0x9   :  { %277 = vmatmul.mubr.msk.bf16.vlgmr.msra.gmra.mrb[0].mxu0 %vm55_vm1, %v31_v6  ;;  %284 = vmatprep.subr.bf16.mxu1 %v339_v1 }
   0xa   :  { %10 = vsyncpa [#allocation4], 0  ;;  %v310_v9 = vld [vmem:[%s437_s3 + $0x18] sm:$0xff]   ;;  %v311_v10 = vld [vmem:[%s437_s3 + $0x20] sm:$0xff]   ;;  %vm26_vm2 = vcmask 130048   ;;  %s341_s17 = smov [#allocation3]  }
   0xb   :  { %v312_v11 = vld [vmem:[%s437_s3 + $0x28] sm:$0xff]   ;;  %v313_v12 = vld [vmem:[%s437_s3 + $0x30] sm:$0xff]   ;;  %v314_v13 = vld [vmem:[%s437_s3 + $0x38] sm:$0xff]   ;;  %27 = vst.msk [vmem:[#allocation2] sm:$0xff] %vm26_vm2, %v339_v1  ;;  %s236_s18 = sshll.u32 %s341_s17, 4  ;;  %s237_s18 = int_to_ptr.vmem [resolvable:$true] %s236_s18 }
   0xc   :  { %285 = vmatpush3.bf16.msra.mxu1 %v309_v8  ;;  %28 = vst.msk [vmem:[#allocation2 + $0x8] sm:$0xff] %vm26_vm2, %v339_v1  ;;  %v247_v14 = vld [vmem:[%s436_s2] ss:$0 sm:$0xff]  ;;  %s315_s19 = scalar_lea.vmem %s237_s18, 256  ;;  %p320_p1 = scmp.lt.s32.totalorder %s237_s18, %s237_s18 }
   0xd   :  { %286 = vmatprep.subr.bf16.mxu1 %v339_v1  ;;  %v259_v32 = vld [vmem:[%s438_s4] ss:$0 sm:$0xff]  ;;  %p316_p0 = scmp.ne.s32.totalorder %s237_s18, %s315_s19  ;;  %p321_p2 = scmp.lt.s32.totalorder %s315_s19, %s315_s19 }
   0xf   :  { %p322_p3 = por %p321_p2, %p320_p1 }
  0x10   :  { %287 = vmatpush3.bf16.msra.mxu1 %v310_v9 }
  0x11   :  { %288 = vmatprep.subr.bf16.mxu1 %v339_v1  ;;  %p323_p4 = pnand %p322_p3, %p316_p0 }
  0x12   :  { %v102_v24 = vld [vmem:[#allocation2] sm:$0xff] }
  0x13   :  { %v103_v26 = vld [vmem:[#allocation2 + $0x8] sm:$0xff] }
  0x14   :  { %289 = vmatpush3.bf16.msra.mxu1 %v311_v10 }
  0x15   :  { %290 = vmatprep.subr.bf16.mxu1 %v339_v1 }
  0x18   :  { %291 = vmatpush3.bf16.msra.mxu1 %v312_v11 }
  0x19   :  { %292 = vmatprep.subr.bf16.mxu1 %v339_v1 }
  0x1c   :  { %293 = vmatpush3.bf16.msra.mxu1 %v313_v12 }
  0x1d   :  { %294 = vmatprep.subr.bf16.mxu1 %v339_v1 }
  0x20   :  { %295 = vmatpush3.bf16.msra.mxu1 %v314_v13 }
  0xdc   :  { %v93_v15 = vpop.f32.mrb[0].mxu0 }
  0xdd   :  { %v94_v16 = vadd.f32 %v247_v14, %v93_v15  ;;  %v278_v17 = vpop.f32.mrb[1].mxu0 }
  0xde   :  { %v96_v18 = vpop.f32.mrb[2].mxu0 }
  0xdf   :  { %v97_v19 = vadd.f32 %v247_v14, %v96_v18  ;;  %v279_v20 = vpop.f32.mrb[3].mxu0  ;;  %v100_v21 = vmax.f32 %v94_v16, 0.0 }
  0xe1   :  { %v101_v22 = vmax.f32 %v97_v19, 0.0 }
  0xe3   :  { %v104_v23 = vpack.c.bf16 %v101_v22, %v100_v21 }
  0xe5   :  { %297 = vmatmul.mubr.bf16.vlgmr.msra.gmra.mrb[0].mxu1 %v104_v23 }
 0x1b8   :  { %v203_v25 = vpop.f32.mrb[0].mxu1 }
 0x1b9   :  { %v210_v27 = vadd.f32 %v203_v25, %v102_v24  ;;  %v298_v28 = vpop.f32.mrb[1].mxu1 }
 0x1ba   :  { %v206_v29 = vpop.f32.mrb[2].mxu1 }
 0x1bb   :  { %213 = vst.msk [vmem:[#allocation2] sm:$0xff] %vm26_vm2, %v210_v27  ;;  %v211_v30 = vadd.f32 %v206_v29, %v103_v26  ;;  %v299_v31 = vpop.f32.mrb[3].mxu1 }
 0x1bd   :  { %214 = vst.msk [vmem:[#allocation2 + $0x8] sm:$0xff] %vm26_vm2, %v211_v30 }
 0x1c2   :  { %v218_v33 = vld [vmem:[#allocation2] sm:$0xff] }
 0x1c3   :  { %v227_v34 = vadd.f32 %v259_v32, %v218_v33 }
 0x1c4   :  { %v219_v35 = vld [vmem:[#allocation2 + $0x8] sm:$0xff] }
 0x1c5   :  { %v228_v36 = vadd.f32 %v259_v32, %v219_v35  ;;  %229 = vst.msk [vmem:[#allocation3] sm:$0xff] %vm26_vm2, %v227_v34 }
 0x1c7   :  { %230 = vst.msk [vmem:[#allocation3 + $0x8] sm:$0xff] %vm26_vm2, %v228_v36 }
 0x1c8   :  { %326 = shalt.err (!%p323_p4)
}
 0x1c9   :  { %s327_s21 = scalar_lea.hbm %s439_s5, 256 }
 0x1ca   :  { %p328_p5 = scmp.ne.s32.totalorder %s439_s5, %s327_s21  ;;  %p331_p6 = scmp.lt.u32.totalorder %s327_s21, %s439_s5 }
 0x1cc   :  { %p333_p7 = pnand %p331_p6, %p328_p5 }
 0x1ce   :  { %336 = shalt.err (!%p333_p7)
}
 0x1cf   :  { %s342_s26 = smov 128   ;;  %s343_s27 = smov 8  }
 0x1d0   :  { %242 = dma.vmem_to_hbm [thread:$0]  %s237_s18, 256, %s439_s5, [#allocation4], %s342_s26, %s342_s26, %s343_s27  }
 0x1d1   :  { %337 = dma.done.wait [#allocation4], 256  }
 0x1d2   :  { %338 = vsyncadd [#allocation4], 4294967040 }
 0x1d3   :  { %246 = vsyncpa [#allocation4], 1 }

</bundles_post_ra>
